<compile_context>
chip_gen: v7x
topology: tpu7x:2x2x1
jax: 0.10.0
libtpu: 0.0.40
codegen_flags: <defaults>
</compile_context>

<pallas_src>
import functools

import jax
import jax.numpy as jnp
from jax.experimental import pallas as pl
from jax.experimental.pallas import tpu as pltpu

_LANE = 128


def _choose_tb(b, per_sample_block_bytes, budget_bytes, cap=16):
    """Largest divisor of b such that the per-step VMEM footprint fits budget."""
    tb_max = max(1, min(cap, budget_bytes // max(1, per_sample_block_bytes)))
    tb = 1
    for cand in range(1, min(b, tb_max) + 1):
        if b % cand == 0:
            tb = cand
    return tb


def _mixup_images_kernel(tb, perm_ref, lam_ref, img_ref, img_hbm_ref, out_ref,
                         gather_buf, copy_sems):
    """out[blk] = lam * x[blk] + (1 - lam) * x[perm[blk]] for a TB-sample block.

    img_ref / out_ref are the auto-pipelined (TB, ri, 128) identity/output
    blocks; the permuted samples are fetched here with TB concurrent
    per-sample DMAs from the raw HBM ref into VMEM scratch.
    """
    blk = pl.program_id(0)
    base = blk * tb

    # Scalar reads before any DMA wait (waits break SMEM sst->sld forwarding).
    lam = lam_ref[0]
    one_minus_lam = 1.0 - lam

    # Issue all TB gather DMAs first so they are in flight concurrently,
    # then wait on all of them.
    copies = []
    for t in range(tb):  # static unroll; tb is a small Python constant
        src = perm_ref[base + t]
        cp = pltpu.make_async_copy(img_hbm_ref.at[src],
                                   gather_buf.at[t],
                                   copy_sems.at[t])
        cp.start()
        copies.append(cp)
    for cp in copies:
        cp.wait()

    out_ref[...] = (
        lam * img_ref[...].astype(jnp.float32)
        + one_minus_lam * gather_buf[...].astype(jnp.float32)
    ).astype(out_ref.dtype)


def mixup_images(images, lam, index, *,
                 vmem_budget_bytes=20 * 1024 * 1024,
                 vmem_limit_bytes=32 * 1024 * 1024):
    """Pallas mixup of stacked images: lam * x + (1 - lam) * x[index]."""
    b = images.shape[0]
    orig_shape = images.shape

    flat = images.reshape(b, -1)
    d = flat.shape[1]
    d_pad = ((d + _LANE - 1) // _LANE) * _LANE
    if d_pad != d:
        # TODO(synk): handle the ragged (D % 128 != 0) tail with an in-kernel
        # masked store instead of this pad + output slice (extra HBM passes).
        flat = jnp.pad(flat, ((0, 0), (0, d_pad - d)))
    ri = d_pad // _LANE
    img3 = flat.reshape(b, ri, _LANE)  # free view when no padding was needed

    out_dtype = (images.dtype if jnp.issubdtype(images.dtype, jnp.floating)
                 else jnp.float32)

    in_item = jnp.dtype(images.dtype).itemsize
    out_item = jnp.dtype(out_dtype).itemsize
    # Resident VMEM per step: identity block x2 (pipeline) + output block x2
    # (pipeline) + gather scratch x1.
    per_sample_block_bytes = ri * _LANE * (3 * in_item + 2 * out_item)
    tb = _choose_tb(b, per_sample_block_bytes, vmem_budget_bytes)

    perm = jnp.asarray(index, dtype=jnp.int32)
    lam_arr = jnp.asarray(lam, dtype=jnp.float32).reshape((1,))

    blk_shape = (tb, ri, _LANE)

    grid_spec = pltpu.PrefetchScalarGridSpec(
        num_scalar_prefetch=1,  # the permutation, read from SMEM in the kernel
        grid=(b // tb,),
        in_specs=[
            pl.BlockSpec(memory_space=pltpu.MemorySpace.SMEM),      # lam (1,)
            pl.BlockSpec(blk_shape, lambda i, perm: (i, 0, 0)),     # x[blk]
            pl.BlockSpec(memory_space=pl.ANY),                      # raw x (HBM)
        ],
        out_specs=pl.BlockSpec(blk_shape, lambda i, perm: (i, 0, 0)),
        scratch_shapes=[
            pltpu.VMEM((tb, ri, _LANE), images.dtype),   # gather buffer
            pltpu.SemaphoreType.DMA((tb,)),              # per-sample DMA sems
        ],
    )

    out3 = pl.pallas_call(
        functools.partial(_mixup_images_kernel, tb),
        grid_spec=grid_spec,
        out_shape=jax.ShapeDtypeStruct((b, ri, _LANE), out_dtype),
        compiler_params=pltpu.CompilerParams(
            dimension_semantics=("parallel",),   # sample blocks are independent
            vmem_limit_bytes=vmem_limit_bytes,
        ),
    )(perm, lam_arr, img3, img3)

    out_flat = out3.reshape(b, d_pad)
    if d_pad != d:
        out_flat = out_flat[:, :d]
    return out_flat.reshape(orig_shape)


def _mix_labels(labels, lam, index):
    """Plain-JAX label mixing: lam * y + (1 - lam) * y[index]."""
    lam = jnp.asarray(lam, jnp.float32)
    mixed = (lam * labels.astype(jnp.float32)
             + (1.0 - lam) * labels[index].astype(jnp.float32))
    out_dtype = (labels.dtype if jnp.issubdtype(labels.dtype, jnp.floating)
                 else jnp.float32)
    return mixed.astype(out_dtype)


def _mixed_one_hot_labels(lam, index, b, num_classes, position):
    """Mixed one-hot labels built directly (two nonzeros per row, no dense mix)."""
    lam = jnp.asarray(lam, jnp.float32)
    rows = jnp.arange(b)
    out = jnp.zeros((b, num_classes), jnp.float32)
    # .add handles index[r] == r (weights sum to 1), matching lam*oh + (1-lam)*oh.
    out = out.at[rows, index + b * position].add(1.0 - lam)
    out = out.at[rows, rows + b * position].add(lam)
    return out


def mixup_collate(batch, *, alpha=1.0, cosine_similarities_size=None,
                  position=0, key=None):
    """Forward of MixupCollate: stack, sample (lam, perm), mix."""
    images, labels = map(list, zip(*batch))
    images = jnp.stack(images)   # (B, C, H, W) -- plain JAX stack (pure memcpy)
    labels = jnp.stack(labels)   # (B, L)
    b = images.shape[0]

    # Host-side randomness of the torch module (np.random.beta / randperm),
    # done with jax.random for determinism.
    if key is None:
        key = jax.random.PRNGKey(0)
    k_lam, k_perm = jax.random.split(key)
    if alpha > 0:
        lam = jax.random.beta(k_lam, alpha, alpha)
    else:
        lam = jnp.float32(1.0)
    index = jax.random.permutation(k_perm, b)

    images_mixed = mixup_images(images, lam, index)
    if cosine_similarities_size:
        labels_mixed = _mixed_one_hot_labels(lam, index, b,
                                             cosine_similarities_size, position)
    else:
        labels_mixed = _mix_labels(labels, lam, index)
    return images_mixed, labels_mixed


if __name__ == "__main__":
    key = jax.random.PRNGKey(0)
    B, C, H, W, L = 2, 4, 16, 16, 8
    V = 16  # cosineSimilarities_size for the one-hot path test

    k_data, k_mix = jax.random.split(key)
    batch = []
    for _ in range(B):
        k_data, k1, k2 = jax.random.split(k_data, 3)
        img = jax.random.normal(k1, (C, H, W), dtype=jnp.float32)
        lab = jax.random.normal(k2, (L,), dtype=jnp.float32)
        batch.append((img, lab))

    images = jnp.stack([s[0] for s in batch])
    labels = jnp.stack([s[1] for s in batch])

    # Same sampling as mixup_collate(key=k_mix) so the reference uses the
    # identical (lam, index).
    k_lam, k_perm = jax.random.split(k_mix)
    lam = jax.random.beta(k_lam, 1.0, 1.0)
    index = jax.random.permutation(k_perm, B)

    # --- Direct kernel check ------------------------------------------------
    imgs_mixed = mixup_images(images, lam, index)
    labs_mixed = _mix_labels(labels, lam, index)
    jax.block_until_ready((imgs_mixed, labs_mixed))

    lam_f = lam.astype(jnp.float32)
    imgs_ref = lam_f * images + (1.0 - lam_f) * images[index]
    labs_ref = lam_f * labels + (1.0 - lam_f) * labels[index]

    assert imgs_mixed.shape == (B, C, H, W) and labs_mixed.shape == (B, L)
    assert jnp.allclose(imgs_mixed, imgs_ref, atol=1e-6, rtol=1e-6)
    assert jnp.allclose(labs_mixed, labs_ref, atol=1e-6, rtol=1e-6)

    # --- Full collate path (default labels) ---------------------------------
    imgs2, labs2 = mixup_collate(batch, alpha=1.0, key=k_mix)
    jax.block_until_ready((imgs2, labs2))
    assert jnp.allclose(imgs2, imgs_ref, atol=1e-6, rtol=1e-6)
    assert jnp.allclose(labs2, labs_ref, atol=1e-6, rtol=1e-6)

    # --- Full collate path (cosineSimilarities one-hot labels) --------------
    imgs3, labs3 = mixup_collate(batch, alpha=1.0, key=k_mix,
                                 cosine_similarities_size=V, position=0)
    jax.block_until_ready((imgs3, labs3))
    oh_a = jax.nn.one_hot(jnp.arange(B), V, dtype=jnp.float32)
    oh_b = jax.nn.one_hot(index, V, dtype=jnp.float32)
    labs_cos_ref = lam_f * oh_a + (1.0 - lam_f) * oh_b
    assert jnp.allclose(imgs3, imgs_ref, atol=1e-6, rtol=1e-6)
    assert jnp.allclose(labs3, labs_cos_ref, atol=1e-6, rtol=1e-6)

    print("KERNEL_OK")
</pallas_src>

<mosaic_0001>
module attributes {stable_mosaic.version = 11 : i64} {
  func.func @_mixup_images_kernel(%arg0: i32, %arg1: memref<2xi32, #tpu.memory_space<smem>>, %arg2: memref<1xf32, #tpu.memory_space<smem>>, %arg3: memref<2x8x128xf32, #tpu.memory_space<vmem>>, %arg4: memref<2x8x128xf32, #tpu.memory_space<any>>, %arg5: memref<2x8x128xf32, #tpu.memory_space<vmem>>, %arg6: memref<2x8x128xf32, #tpu.memory_space<vmem>>, %arg7: memref<2x!tpu.dma_semaphore, #tpu.memory_space<semaphore_mem>>) attributes {dimension_semantics = [#tpu.dimension_semantics<parallel>], iteration_bounds = array<i64: 1>, scalar_prefetch = 1 : i64, scratch_operands = 2 : i64, tpu.core_type = #tpu.core_type<tc>, window_params = [{transform_indices = @transform_0, window_bounds = array<i64: 1>}, {transform_indices = @transform_1, window_bounds = array<i64: 2, 8, 128>}, {}, {transform_indices = @transform_3, window_bounds = array<i64: 2, 8, 128>}]} {
    %c2_i32 = arith.constant 2 : i32
    %0 = arith.muli %arg0, %c2_i32 : i32
    %c0 = arith.constant 0 : index
    %1 = memref.load %arg2[%c0] : memref<1xf32, #tpu.memory_space<smem>>
    %cst = arith.constant 1.000000e+00 : f32
    %2 = arith.subf %cst, %1 : f32
    %c0_i32 = arith.constant 0 : i32
    %3 = arith.addi %0, %c0_i32 : i32
    %4 = arith.index_cast %3 : i32 to index
    %5 = memref.load %arg1[%4] : memref<2xi32, #tpu.memory_space<smem>>
    %c0_i32_0 = arith.constant 0 : i32
    %c0_i32_1 = arith.constant 0 : i32
    %c0_i32_2 = arith.constant 0 : i32
    %c0_i32_3 = arith.constant 0 : i32
    %6 = tpu.memref_slice %arg4[%5, %c0_i32_2, %c0_i32_3] : memref<2x8x128xf32, #tpu.memory_space<any>> -> memref<1x8x128xf32, #tpu.memory_space<any>>
    %7 = tpu.memref_squeeze %6 : memref<1x8x128xf32, #tpu.memory_space<any>> -> memref<8x128xf32, #tpu.memory_space<any>>
    %c0_i32_4 = arith.constant 0 : i32
    %c0_i32_5 = arith.constant 0 : i32
    %8 = tpu.memref_slice %arg6[%c0_i32_0, %c0_i32_4, %c0_i32_5] : memref<2x8x128xf32, #tpu.memory_space<vmem>> -> memref<1x8x128xf32, #tpu.memory_space<vmem>>
    %9 = tpu.memref_squeeze %8 : memref<1x8x128xf32, #tpu.memory_space<vmem>> -> memref<8x128xf32, #tpu.memory_space<vmem>>
    %10 = tpu.memref_slice %arg7[%c0_i32_1] : memref<2x!tpu.dma_semaphore, #tpu.memory_space<semaphore_mem>> -> memref<1x!tpu.dma_semaphore, #tpu.memory_space<semaphore_mem>>
    %11 = tpu.memref_squeeze %10 : memref<1x!tpu.dma_semaphore, #tpu.memory_space<semaphore_mem>> -> memref<!tpu.dma_semaphore, #tpu.memory_space<semaphore_mem>>
    tpu.enqueue_dma source(%7 : memref<8x128xf32, #tpu.memory_space<any>>) target(%9 : memref<8x128xf32, #tpu.memory_space<vmem>>) target_semaphore(%11 : memref<!tpu.dma_semaphore, #tpu.memory_space<semaphore_mem>>)
    %c1_i32 = arith.constant 1 : i32
    %12 = arith.addi %0, %c1_i32 : i32
    %13 = arith.index_cast %12 : i32 to index
    %14 = memref.load %arg1[%13] : memref<2xi32, #tpu.memory_space<smem>>
    %c1_i32_6 = arith.constant 1 : i32
    %c1_i32_7 = arith.constant 1 : i32
    %c0_i32_8 = arith.constant 0 : i32
    %c0_i32_9 = arith.constant 0 : i32
    %15 = tpu.memref_slice %arg4[%14, %c0_i32_8, %c0_i32_9] : memref<2x8x128xf32, #tpu.memory_space<any>> -> memref<1x8x128xf32, #tpu.memory_space<any>>
    %16 = tpu.memref_squeeze %15 : memref<1x8x128xf32, #tpu.memory_space<any>> -> memref<8x128xf32, #tpu.memory_space<any>>
    %c0_i32_10 = arith.constant 0 : i32
    %c0_i32_11 = arith.constant 0 : i32
    %17 = tpu.memref_slice %arg6[%c1_i32_6, %c0_i32_10, %c0_i32_11] : memref<2x8x128xf32, #tpu.memory_space<vmem>> -> memref<1x8x128xf32, #tpu.memory_space<vmem>>
    %18 = tpu.memref_squeeze %17 : memref<1x8x128xf32, #tpu.memory_space<vmem>> -> memref<8x128xf32, #tpu.memory_space<vmem>>
    %19 = tpu.memref_slice %arg7[%c1_i32_7] : memref<2x!tpu.dma_semaphore, #tpu.memory_space<semaphore_mem>> -> memref<1x!tpu.dma_semaphore, #tpu.memory_space<semaphore_mem>>
    %20 = tpu.memref_squeeze %19 : memref<1x!tpu.dma_semaphore, #tpu.memory_space<semaphore_mem>> -> memref<!tpu.dma_semaphore, #tpu.memory_space<semaphore_mem>>
    tpu.enqueue_dma source(%16 : memref<8x128xf32, #tpu.memory_space<any>>) target(%18 : memref<8x128xf32, #tpu.memory_space<vmem>>) target_semaphore(%20 : memref<!tpu.dma_semaphore, #tpu.memory_space<semaphore_mem>>)
    %c0_i32_12 = arith.constant 0 : i32
    %c0_i32_13 = arith.constant 0 : i32
    %c0_i32_14 = arith.constant 0 : i32
    %c0_i32_15 = arith.constant 0 : i32
    %21 = tpu.memref_slice %arg4[%5, %c0_i32_14, %c0_i32_15] : memref<2x8x128xf32, #tpu.memory_space<any>> -> memref<1x8x128xf32, #tpu.memory_space<any>>
    %22 = tpu.memref_squeeze %21 : memref<1x8x128xf32, #tpu.memory_space<any>> -> memref<8x128xf32, #tpu.memory_space<any>>
    %c0_i32_16 = arith.constant 0 : i32
    %c0_i32_17 = arith.constant 0 : i32
    %23 = tpu.memref_slice %arg6[%c0_i32_12, %c0_i32_16, %c0_i32_17] : memref<2x8x128xf32, #tpu.memory_space<vmem>> -> memref<1x8x128xf32, #tpu.memory_space<vmem>>
    %24 = tpu.memref_squeeze %23 : memref<1x8x128xf32, #tpu.memory_space<vmem>> -> memref<8x128xf32, #tpu.memory_space<vmem>>
    %25 = tpu.memref_slice %arg7[%c0_i32_13] : memref<2x!tpu.dma_semaphore, #tpu.memory_space<semaphore_mem>> -> memref<1x!tpu.dma_semaphore, #tpu.memory_space<semaphore_mem>>
    %26 = tpu.memref_squeeze %25 : memref<1x!tpu.dma_semaphore, #tpu.memory_space<semaphore_mem>> -> memref<!tpu.dma_semaphore, #tpu.memory_space<semaphore_mem>>
    tpu.wait_dma2 semaphore(%26 : memref<!tpu.dma_semaphore, #tpu.memory_space<semaphore_mem>>) src(%22 : memref<8x128xf32, #tpu.memory_space<any>>) dst(%24 : memref<8x128xf32, #tpu.memory_space<vmem>>)
    %c1_i32_18 = arith.constant 1 : i32
    %c1_i32_19 = arith.constant 1 : i32
    %c0_i32_20 = arith.constant 0 : i32
    %c0_i32_21 = arith.constant 0 : i32
    %27 = tpu.memref_slice %arg4[%14, %c0_i32_20, %c0_i32_21] : memref<2x8x128xf32, #tpu.memory_space<any>> -> memref<1x8x128xf32, #tpu.memory_space<any>>
    %28 = tpu.memref_squeeze %27 : memref<1x8x128xf32, #tpu.memory_space<any>> -> memref<8x128xf32, #tpu.memory_space<any>>
    %c0_i32_22 = arith.constant 0 : i32
    %c0_i32_23 = arith.constant 0 : i32
    %29 = tpu.memref_slice %arg6[%c1_i32_18, %c0_i32_22, %c0_i32_23] : memref<2x8x128xf32, #tpu.memory_space<vmem>> -> memref<1x8x128xf32, #tpu.memory_space<vmem>>
    %30 = tpu.memref_squeeze %29 : memref<1x8x128xf32, #tpu.memory_space<vmem>> -> memref<8x128xf32, #tpu.memory_space<vmem>>
    %31 = tpu.memref_slice %arg7[%c1_i32_19] : memref<2x!tpu.dma_semaphore, #tpu.memory_space<semaphore_mem>> -> memref<1x!tpu.dma_semaphore, #tpu.memory_space<semaphore_mem>>
    %32 = tpu.memref_squeeze %31 : memref<1x!tpu.dma_semaphore, #tpu.memory_space<semaphore_mem>> -> memref<!tpu.dma_semaphore, #tpu.memory_space<semaphore_mem>>
    tpu.wait_dma2 semaphore(%32 : memref<!tpu.dma_semaphore, #tpu.memory_space<semaphore_mem>>) src(%28 : memref<8x128xf32, #tpu.memory_space<any>>) dst(%30 : memref<8x128xf32, #tpu.memory_space<vmem>>)
    %c0_24 = arith.constant 0 : index
    %c0_25 = arith.constant 0 : index
    %c0_26 = arith.constant 0 : index
    %33 = vector.load %arg3[%c0_24, %c0_25, %c0_26] : memref<2x8x128xf32, #tpu.memory_space<vmem>>, vector<2x8x128xf32>
    %34 = vector.broadcast %1 : f32 to vector<2x8x128xf32>
    %35 = arith.mulf %34, %33 : vector<2x8x128xf32>
    %c0_27 = arith.constant 0 : index
    %c0_28 = arith.constant 0 : index
    %c0_29 = arith.constant 0 : index
    %36 = vector.load %arg6[%c0_27, %c0_28, %c0_29] : memref<2x8x128xf32, #tpu.memory_space<vmem>>, vector<2x8x128xf32>
    %37 = vector.broadcast %2 : f32 to vector<2x8x128xf32>
    %38 = arith.mulf %37, %36 : vector<2x8x128xf32>
    %39 = arith.addf %35, %38 : vector<2x8x128xf32>
    %c0_30 = arith.constant 0 : index
    %c0_31 = arith.constant 0 : index
    %c0_32 = arith.constant 0 : index
    %40 = vector.load %arg5[%c0_30, %c0_31, %c0_32] : memref<2x8x128xf32, #tpu.memory_space<vmem>>, vector<2x8x128xf32>
    tpu.vector_store %arg5[%c0_30, %c0_31, %c0_32], %39 {strides = array<i32>} : memref<2x8x128xf32, #tpu.memory_space<vmem>>, vector<2x8x128xf32>,
    return
  }
  func.func @transform_0(%arg0: i32, %arg1: memref<2xi32, #tpu.memory_space<smem>>) -> i32 {
    %c0_i32 = arith.constant 0 : i32
    %c0_i32_0 = arith.constant 0 : i32
    return %c0_i32 : i32
  }
  func.func @transform_1(%arg0: i32, %arg1: memref<2xi32, #tpu.memory_space<smem>>) -> (i32, i32, i32) {
    %c0_i32 = arith.constant 0 : i32
    %c0_i32_0 = arith.constant 0 : i32
    %c0_i32_1 = arith.constant 0 : i32
    return %arg0, %c0_i32, %c0_i32_0 : i32, i32, i32
  }
  func.func @transform_3(%arg0: i32, %arg1: memref<2xi32, #tpu.memory_space<smem>>) -> (i32, i32, i32) {
    %c0_i32 = arith.constant 0 : i32
    %c0_i32_0 = arith.constant 0 : i32
    %c0_i32_1 = arith.constant 0 : i32
    return %arg0, %c0_i32, %c0_i32_0 : i32, i32, i32
  }
}

</mosaic_0001>

<bundles_post_ra>
// kernel: tpu_custom_call.1
= control target key start
LH: loop header
LB: loop body
LE: loop exit
PB: predicated region body
PF: predicated region fallthrough
CT: control target
= control target key end

     0   :  { %s366_s0 = inlined_call_operand.vmem [shape: s32[2], index: 0, kind: input, shape index: {}]   ;;  %s367_s1 = inlined_call_operand.<no memory space> [shape: f32[1], index: 1, kind: input, shape index: {}]   ;;  %s368_s2 = inlined_call_operand.hbm [shape: f32[2,8,128], index: 2, kind: input, shape index: {}]   ;;  %s369_s3 = inlined_call_operand.hbm [shape: f32[2,8,128], index: 3, kind: input, shape index: {}]   ;;  %s370_s4 = inlined_call_operand.hbm [shape: f32[2,8,128], index: 4, kind: output, shape index: {}]  }
   0x1   :  { %s9_s17 = sshll.u32 %s366_s0, 4  ;;  %s10_s17 = int_to_ptr.vmem [resolvable:$true] %s9_s17 }
   0x2   :  { %s140_s18 = scalar_lea.vmem %s10_s17, 16  ;;  %p145_p1 = scmp.lt.s32.totalorder %s10_s17, %s10_s17 }
   0x3   :  { %p141_p0 = scmp.ne.s32.totalorder %s10_s17, %s140_s18  ;;  %p146_p2 = scmp.lt.s32.totalorder %s140_s18, %s140_s18 }
   0x5   :  { %p147_p3 = por %p146_p2, %p145_p1 }
   0x7   :  { %p148_p4 = pnand %p147_p3, %p141_p0 }
   0x9   :  { %151 = shalt.err (!%p148_p4)  }
   0xa   :  { %s254_s19 = smov [#allocation5]  }
   0xb   :  { %12 = dma.vmem_to_smem %s10_s17, 16, %s254_s19, [#allocation4] }
   0xc   :  { %244 = dma.done.wait [#allocation4], 16 }
   0xd   :  { %245 = vsyncadd [#allocation4], 4294967280 }
   0xe   :  { %15 = sfence }
   0xf   :  { %16 = vsyncpa [#allocation8], 0 }
  0x10   :  { %17 = vsyncpa [#allocation9], 0  ;;  %s255_s20 = smov [#allocation7]   ;;  %s152_s23 = scalar_lea.hbm %s368_s2, 256 }
  0x11   :  { %s25_s21 = sshll.u32 %s255_s20, 4  ;;  %p153_p5 = scmp.ne.s32.totalorder %s368_s2, %s152_s23  ;;  %s26_s21 = int_to_ptr.vmem [resolvable:$true] %s25_s21 }
  0x12   :  { %p156_p6 = scmp.lt.u32.totalorder %s152_s23, %s368_s2 }
  0x14   :  { %p158_p7 = pnand %p156_p6, %p153_p5 }
  0x16   :  { %161 = shalt.err (!%p158_p7)
}
  0x17   :  { %s162_s28 = scalar_lea.vmem %s26_s21, 256  ;;  %p167_p9 = scmp.lt.s32.totalorder %s26_s21, %s26_s21 }
  0x18   :  { %p163_p8 = scmp.ne.s32.totalorder %s26_s21, %s162_s28  ;;  %p168_p10 = scmp.lt.s32.totalorder %s162_s28, %s162_s28 }
  0x1a   :  { %p169_p11 = por %p168_p10, %p167_p9 }
  0x1c   :  { %p170_p12 = pnand %p169_p11, %p163_p8 }
  0x1e   :  { %173 = shalt.err (!%p170_p12)
}
  0x1f   :  { %s256_s29 = smov 128   ;;  %s257_s30 = smov 8  }
  0x20   :  { %31 = dma.hbm_to_vmem [thread:$0]  %s368_s2, 256, %s26_s21, [#allocation8], %s256_s29, %s256_s29, %s257_s30  }
  0x21   :  { %246 = dma.done.wait [#allocation8], 256  }
  0x22   :  { %247 = vsyncadd [#allocation8], 4294967040  ;;  %s37_s9 = ssub.f32 1.0, %s367_s1  ;;  %s126_s10 = sld [smem:[#allocation5 + $0x1]] }
  0x23   :  { %s38_s11 = sld [smem:[#allocation5]]  ;;  %s258_s12 = smov [#allocation2]  }
  0x24   :  { %s49_s13 = sshll.u32 %s258_s12, 4  ;;  %s259_s14 = smov [#allocation2 + $0x8]   ;;  %s307_s13 = int_to_ptr.vmem [resolvable:$true] %s49_s13 }
  0x25   :  { %s67_s15 = sshll.u32 %s259_s14, 4  ;;  %s176_s25 = scalar_lea.hbm %s369_s3, 256  ;;  %s309_s15 = int_to_ptr.vmem [resolvable:$true] %s67_s15 }
  0x28   :  { %s132_s17 = sshll.u32 %s126_s10, 7 }
  0x29   :  { %s131_s16 = sshll.u32 %s38_s11, 7  ;;  %s317_s22 = scalar_lea.hbm %s369_s3, %s132_s17 }
  0x2a   :  { %s41_s19 = scalar_lea.hbm %s369_s3, %s131_s16 }
  0x2b   :  { %s174_s0 = scalar_lea.hbm %s41_s19, 128  ;;  %p177_p0 = scmp.lt.u32.totalorder %s41_s19, %s369_s3 }
  0x2c   :  { %p175_p13 = scmp.ne.s32.totalorder %s41_s19, %s174_s0  ;;  %p178_p1 = scmp.lt.u32.totalorder %s176_s25, %s174_s0 }
  0x2d   :  { %p180_p3 = scmp.lt.u32.totalorder %s174_s0, %s41_s19 }
  0x2e   :  { %p179_p2 = por %p178_p1, %p177_p0 }
  0x30   :  { %p181_p4 = por %p180_p3, %p179_p2 }
  0x32   :  { %p182_p5 = pnand %p181_p4, %p175_p13 }
  0x34   :  { %185 = shalt.err (!%p182_p5)  }
  0x35   :  { %s186_s28 = scalar_lea.vmem %s307_s13, 128  ;;  %s190_s5 = scalar_lea.vmem %s307_s13, 256 }
  0x36   :  { %p187_p6 = scmp.ne.s32.totalorder %s307_s13, %s186_s28  ;;  %p191_p7 = scmp.lt.s32.totalorder %s307_s13, %s307_s13 }
  0x37   :  { %p192_p8 = scmp.lt.s32.totalorder %s190_s5, %s186_s28 }
  0x39   :  { %p193_p9 = por %p192_p8, %p191_p7 }
  0x3b   :  { %p194_p10 = pnand %p193_p9, %p187_p6 }
  0x3d   :  { %197 = shalt.err (!%p194_p10)  }
  0x3e   :  { %52 = dma.hbm_to_vmem [thread:$0]  %s41_s19, 128, %s307_s13, [#allocation3] }
  0x3f   :  { %s198_s6 = scalar_lea.hbm %s317_s22, 128  ;;  %p201_p12 = scmp.lt.u32.totalorder %s317_s22, %s369_s3 }
  0x40   :  { %p199_p11 = scmp.ne.s32.totalorder %s317_s22, %s198_s6  ;;  %p202_p13 = scmp.lt.u32.totalorder %s176_s25, %s198_s6 }
  0x41   :  { %p204_p1 = scmp.lt.u32.totalorder %s198_s6, %s317_s22 }
  0x42   :  { %p203_p0 = por %p202_p13, %p201_p12 }
  0x44   :  { %p205_p2 = por %p204_p1, %p203_p0 }
  0x46   :  { %p206_p3 = pnand %p205_p2, %p199_p11 }
  0x48   :  { %209 = shalt.err (!%p206_p3)  }
  0x49   :  { %s210_s10 = scalar_lea.vmem %s309_s15, 128  ;;  %p215_p5 = scmp.lt.s32.totalorder %s309_s15, %s307_s13 }
  0x4a   :  { %p211_p4 = scmp.ne.s32.totalorder %s309_s15, %s210_s10  ;;  %p216_p6 = scmp.lt.s32.totalorder %s190_s5, %s210_s10 }
  0x4c   :  { %p217_p7 = por %p216_p6, %p215_p5 }
  0x4e   :  { %p218_p8 = pnand %p217_p7, %p211_p4 }
  0x50   :  { %221 = shalt.err (!%p218_p8)  }
  0x51   :  { %70 = dma.hbm_to_vmem [thread:$0]  %s317_s22, 128, %s309_s15, [#allocation3 + $0x1] }
  0x52   :  { %248 = dma.done.wait [#allocation3], 128 }
  0x53   :  { %249 = vsyncadd [#allocation3], 4294967168 }
  0x54   :  { %250 = dma.done.wait [#allocation3 + $0x1], 128 }
  0x55   :  { %251 = vsyncadd [#allocation3 + $0x1], 4294967168  ;;  %v78_v0 = vstv %s367_s1  ;;  %v83_v1 = vstv %s37_s9  ;;  %v76_v2 = vld [vmem:[#allocation7] sm:$0xff]  ;;  %v81_v3 = vld [vmem:[#allocation2] sm:$0xff]  ;;  %s260_s13 = smov [#allocation10]  }
  0x56   :  { %v77_v4 = vld [vmem:[#allocation7 + $0x8] sm:$0xff]  ;;  %v79_v5 = vmul.f32 %v78_v0, %v76_v2  ;;  %v84_v6 = vmul.f32 %v83_v1, %v81_v3  ;;  %v82_v8 = vld [vmem:[#allocation2 + $0x8] sm:$0xff]  ;;  %s95_s15 = sshll.u32 %s260_s13, 4  ;;  %s96_s15 = int_to_ptr.vmem [resolvable:$true] %s95_s15 }
  0x57   :  { %v80_v7 = vmul.f32 %v78_v0, %v77_v4  ;;  %v85_v9 = vmul.f32 %v83_v1, %v82_v8  ;;  %s222_s16 = scalar_lea.vmem %s96_s15, 256  ;;  %p227_p10 = scmp.lt.s32.totalorder %s96_s15, %s96_s15 }
  0x58   :  { %v86_v10 = vadd.f32 %v84_v6, %v79_v5  ;;  %p223_p9 = scmp.ne.s32.totalorder %s96_s15, %s222_s16  ;;  %p228_p11 = scmp.lt.s32.totalorder %s222_s16, %s222_s16 }
  0x59   :  { %v87_v11 = vadd.f32 %v85_v9, %v80_v7 }
  0x5a   :  { %88 = vst [vmem:[#allocation10] sm:$0xff] %v86_v10  ;;  %p229_p12 = por %p228_p11, %p227_p10 }
  0x5b   :  { %89 = vst [vmem:[#allocation10 + $0x8] sm:$0xff] %v87_v11 }
  0x5c   :  { %p230_p13 = pnand %p229_p12, %p223_p9 }
  0x5e   :  { %233 = shalt.err (!%p230_p13)
}
  0x5f   :  { %s234_s17 = scalar_lea.hbm %s370_s4, 256 }
  0x60   :  { %p235_p0 = scmp.ne.s32.totalorder %s370_s4, %s234_s17  ;;  %p238_p1 = scmp.lt.u32.totalorder %s234_s17, %s370_s4 }
  0x62   :  { %p240_p2 = pnand %p238_p1, %p235_p0 }
  0x64   :  { %243 = shalt.err (!%p240_p2)
}
  0x65   :  { %101 = dma.vmem_to_hbm [thread:$0]  %s96_s15, 256, %s370_s4, [#allocation9], %s256_s29, %s256_s29, %s257_s30  }
  0x66   :  { %252 = dma.done.wait [#allocation9], 256  }
  0x67   :  { %253 = vsyncadd [#allocation9], 4294967040 }
  0x68   :  { %105 = vsyncpa [#allocation8], 1 }
  0x69   :  { %106 = vsyncpa [#allocation9], 1 }
  0x6a   :  { %107 = vsyncmov [#allocation3] }
  0x6d   :  { %s108_s0 = vpop.sfrf %107 }
  0x6e   :  { %p129_p3 = scmp.ne.s32.totalorder %s108_s0, 0 }
  0x70   :  { %112 = shalt.err (%p129_p3)  }
  0x71   :  { %114 = vsyncmov [#allocation3 + $0x1] }
  0x74   :  { %s115_s23 = vpop.sfrf %114 }
  0x75   :  { %p130_p4 = scmp.ne.s32.totalorder %s115_s23, 0 }
  0x77   :  { %119 = shalt.err (%p130_p4)  }

</bundles_post_ra>
